<compile_context>
chip_gen: v6e
topology: v6e:2x2x1
jax: 0.10.0
libtpu: 0.0.40
codegen_flags: <defaults>
</compile_context>

<pallas_src>
import functools

import jax
import jax.numpy as jnp
from jax.experimental import pallas as pl
from jax.experimental.pallas import tpu as pltpu


# ---------------------------------------------------------------------------
# Pass 1: pooled attention  attn = sigmoid(relu(W2 @ avg) + relu(W2 @ max))
# ---------------------------------------------------------------------------
def _pooled_attn_kernel(x_ref, w2_ref, attn_ref, sum_sc, max_sc, *, inv_hw):
    # x_ref   : (1, Cin, T)  HW tile of one batch element (channels-first)
    # w2_ref  : (Cout, Cin)  shared-MLP weight (resident, constant index_map)
    # attn_ref: (1, Cout, 1) output block, written only at the last HW tile
    # sum_sc / max_sc: (Cin, 1) f32 accumulators (persist across grid steps)
    t = pl.program_id(1)

    @pl.when(t == 0)
    def _():
        sum_sc[...] = jnp.zeros_like(sum_sc)
        max_sc[...] = jnp.full_like(max_sc, -jnp.inf)

    # Only the tiny pooled branch accumulates in f32 (exact for f32 inputs,
    # needed for accuracy if the input arrives as bf16).
    x = x_ref[0].astype(jnp.float32)                                # (Cin, T)
    sum_sc[...] = sum_sc[...] + jnp.sum(x, axis=-1, keepdims=True)  # (Cin, 1)
    max_sc[...] = jnp.maximum(max_sc[...], jnp.max(x, axis=-1, keepdims=True))

    @pl.when(t == pl.num_programs(1) - 1)
    def _():
        w2 = w2_ref[...].astype(jnp.float32)                        # (Cout, Cin)
        avg = sum_sc[...] * inv_hw                                  # (Cin, 1)
        mx = max_sc[...]                                            # (Cin, 1)
        # Shared MLP (1x1 conv, bias=False) + ReLU on both pooled vectors.
        # Cold path: runs once per batch element; cost is negligible, so the
        # two tiny matmuls are kept separate for lowering simplicity.
        avgout = jnp.maximum(
            jnp.dot(w2, avg, preferred_element_type=jnp.float32), 0.0)
        maxout = jnp.maximum(
            jnp.dot(w2, mx, preferred_element_type=jnp.float32), 0.0)
        attn = jax.nn.sigmoid(avgout + maxout)                      # (Cout, 1)
        attn_ref[0] = attn.astype(attn_ref.dtype)


# ---------------------------------------------------------------------------
# Pass 2: main conv path, scaled by the precomputed attention
# ---------------------------------------------------------------------------
def _channel_attn_kernel(x_ref, w1_ref, attn_ref, o_ref):
    # x_ref   : (1, Cin, T)   native dtype, fed straight to the MXU
    # w1_ref  : (Cout, Cin)   conv1 weight (resident)
    # attn_ref: (1, Cout, 1)  f32 attention for this batch element
    # o_ref   : (1, Cout, T)  lane-dense output tile
    down = jnp.dot(w1_ref[...], x_ref[0],
                   preferred_element_type=jnp.float32)              # (Cout, T) f32
    down = jnp.maximum(down, 0.0)
    o_ref[0] = (down * attn_ref[0]).astype(o_ref.dtype)


# ---------------------------------------------------------------------------
# Wrapper
# ---------------------------------------------------------------------------
def _choose_hw_tile(hw, c_in, c_out, itemsize, budget_bytes=10 * 1024 * 1024):
    """Largest HW tile (multiple of 128, dividing HW) whose double-buffered
    x + out tiles stay within the VMEM budget (safe on v7x's 64 MiB)."""
    if hw % 128 != 0:
        # TODO(synk): mask ragged HW tiles; for now fall back to a full-HW block.
        return hw
    per_col = 2 * (c_in + c_out) * itemsize        # x + out, double-buffered
    cap = max(128, (budget_bytes // per_col) // 128 * 128)
    t = min(cap, hw)
    while hw % t != 0:
        t -= 128
    return t


def channel_attn_forward(x_nchw, w1, w2, *, vmem_tile_budget_bytes=10 * 1024 * 1024):
    """x_nchw: (N, Cin, H, W); w1, w2: (Cout, Cin) (PyTorch conv weight squeezed).
    Returns (N, Cout, H, W)."""
    N, C_in, H, W = x_nchw.shape
    C_out = w1.shape[0]
    HW = H * W

    # Free reshape -- channels-first layout preserved, no transpose round-trips.
    x = x_nchw.reshape(N, C_in, HW)

    itemsize = jnp.dtype(x.dtype).itemsize
    T = _choose_hw_tile(HW, C_in, C_out, itemsize, vmem_tile_budget_bytes)
    n_hw_tiles = HW // T

    # ---- Pass 1: pooled attention -> (N, Cout, 1) f32 ----------------------
    attn = pl.pallas_call(
        functools.partial(_pooled_attn_kernel, inv_hw=1.0 / HW),
        out_shape=jax.ShapeDtypeStruct((N, C_out, 1), jnp.float32),
        grid_spec=pltpu.PrefetchScalarGridSpec(
            num_scalar_prefetch=0,
            grid=(N, n_hw_tiles),
            in_specs=[
                pl.BlockSpec((1, C_in, T), lambda b, t: (b, 0, t)),
                pl.BlockSpec((C_out, C_in), lambda b, t: (0, 0)),
            ],
            out_specs=pl.BlockSpec((1, C_out, 1), lambda b, t: (b, 0, 0)),
            scratch_shapes=[
                pltpu.VMEM((C_in, 1), jnp.float32),   # running sum
                pltpu.VMEM((C_in, 1), jnp.float32),   # running max
            ],
        ),
        compiler_params=pltpu.CompilerParams(
            dimension_semantics=("parallel", "arbitrary"),
            vmem_limit_bytes=32 * 1024 * 1024),
    )(x, w2)

    # ---- Pass 2: relu(W1 @ x) * attn, tiled over (N, HW) -------------------
    out = pl.pallas_call(
        _channel_attn_kernel,
        out_shape=jax.ShapeDtypeStruct((N, C_out, HW), x.dtype),
        grid_spec=pltpu.PrefetchScalarGridSpec(
            num_scalar_prefetch=0,
            grid=(N, n_hw_tiles),
            in_specs=[
                pl.BlockSpec((1, C_in, T), lambda b, t: (b, 0, t)),
                pl.BlockSpec((C_out, C_in), lambda b, t: (0, 0)),
                pl.BlockSpec((1, C_out, 1), lambda b, t: (b, 0, 0)),
            ],
            out_specs=pl.BlockSpec((1, C_out, T), lambda b, t: (b, 0, t)),
        ),
        compiler_params=pltpu.CompilerParams(
            dimension_semantics=("parallel", "parallel"),
            vmem_limit_bytes=32 * 1024 * 1024),
    )(x, w1, attn)

    return out.reshape(N, C_out, H, W)


# ---------------------------------------------------------------------------
# Pure-JAX reference (mirrors the PyTorch forward; both convs bias=False).
# ---------------------------------------------------------------------------
def _reference(x_nchw, w1, w2):
    down = jnp.maximum(jnp.einsum('oc,nchw->nohw', w1, x_nchw), 0.0)
    avg = jnp.mean(x_nchw, axis=(2, 3))                  # (N, Cin)
    mx = jnp.max(x_nchw, axis=(2, 3))                    # (N, Cin)
    avgout = jnp.maximum(avg @ w2.T, 0.0)                # (N, Cout)
    maxout = jnp.maximum(mx @ w2.T, 0.0)
    attn = jax.nn.sigmoid(avgout + maxout)[:, :, None, None]
    return down * attn


if __name__ == "__main__":
    key = jax.random.PRNGKey(0)
    k_x, k_w1, k_w2 = jax.random.split(key, 3)

    N, C_in, H, W = 2, 4, 16, 16
    C_out = 8

    x = jax.random.normal(k_x, (N, C_in, H, W), dtype=jnp.float32)
    # PyTorch Conv2d weights are (Cout, Cin, 1, 1); stored here as (Cout, Cin).
    w1 = jax.random.normal(k_w1, (C_out, C_in), dtype=jnp.float32) * 0.1
    w2 = jax.random.normal(k_w2, (C_out, C_in), dtype=jnp.float32) * 0.1

    out = jax.block_until_ready(channel_attn_forward(x, w1, w2))

    ref = _reference(x, w1, w2)
    assert out.shape == (N, C_out, H, W)
    assert jnp.allclose(out, ref, atol=1e-5, rtol=1e-5), float(
        jnp.max(jnp.abs(out - ref)))

    print("KERNEL_OK")
</pallas_src>

<mosaic_0001>
module attributes {stable_mosaic.version = 11 : i64} {
  func.func @_pooled_attn_kernel(%arg0: i32, %arg1: i32, %arg2: memref<1x4x256xf32, #tpu.memory_space<vmem>>, %arg3: memref<8x4xf32, #tpu.memory_space<vmem>>, %arg4: memref<1x8x1xf32, #tpu.memory_space<vmem>>, %arg5: memref<4x1xf32, #tpu.memory_space<vmem>>, %arg6: memref<4x1xf32, #tpu.memory_space<vmem>>) attributes {dimension_semantics = [#tpu.dimension_semantics<parallel>, #tpu.dimension_semantics<arbitrary>], iteration_bounds = array<i64: 2, 1>, scalar_prefetch = 0 : i64, scratch_operands = 2 : i64, tpu.core_type = #tpu.core_type<tc>, window_params = [{transform_indices = @transform_0, window_bounds = array<i64: 1, 4, 256>}, {pipeline_mode = #tpu.pipeline_mode<synchronous>, transform_indices = @transform_1, window_bounds = array<i64: 8, 4>}, {transform_indices = @transform_2, window_bounds = array<i64: 1, 8, 1>}]} {
    %c0_i32 = arith.constant 0 : i32
    %0 = arith.cmpi eq, %arg1, %c0_i32 : i32
    %1 = arith.extui %0 : i1 to i32
    %c0_i32_0 = arith.constant 0 : i32
    %2 = arith.cmpi ne, %1, %c0_i32_0 : i32
    scf.if %2 {
      %cst_14 = arith.constant 0.000000e+00 : f32
      %18 = vector.broadcast %cst_14 : f32 to vector<4x1xf32>
      %c0_15 = arith.constant 0 : index
      %c0_16 = arith.constant 0 : index
      %19 = vector.load %arg5[%c0_15, %c0_16] : memref<4x1xf32, #tpu.memory_space<vmem>>, vector<4x1xf32>
      tpu.vector_store %arg5[%c0_15, %c0_16], %18 {strides = array<i32>} : memref<4x1xf32, #tpu.memory_space<vmem>>, vector<4x1xf32>,
      %cst_17 = arith.constant 0xFF800000 : f32
      %20 = vector.broadcast %cst_17 : f32 to vector<4x1xf32>
      %c0_18 = arith.constant 0 : index
      %c0_19 = arith.constant 0 : index
      %21 = vector.load %arg6[%c0_18, %c0_19] : memref<4x1xf32, #tpu.memory_space<vmem>>, vector<4x1xf32>
      tpu.vector_store %arg6[%c0_18, %c0_19], %20 {strides = array<i32>} : memref<4x1xf32, #tpu.memory_space<vmem>>, vector<4x1xf32>,
    } else {
    }
    %c0 = arith.constant 0 : index
    %c0_1 = arith.constant 0 : index
    %c0_2 = arith.constant 0 : index
    %3 = vector.load %arg2[%c0, %c0_1, %c0_2] : memref<1x4x256xf32, #tpu.memory_space<vmem>>, vector<1x4x256xf32>
    %4 = vector.shape_cast %3 : vector<1x4x256xf32> to vector<4x256xf32>
    %c0_3 = arith.constant 0 : index
    %c0_4 = arith.constant 0 : index
    %5 = vector.load %arg5[%c0_3, %c0_4] : memref<4x1xf32, #tpu.memory_space<vmem>>, vector<4x1xf32>
    %cst = arith.constant dense<0.000000e+00> : vector<4xf32>
    %6 = vector.multi_reduction <add>, %4, %cst [1] : vector<4x256xf32> to vector<4xf32>
    %7 = vector.shape_cast %6 : vector<4xf32> to vector<4x1xf32>
    %8 = arith.addf %5, %7 : vector<4x1xf32>
    %c0_5 = arith.constant 0 : index
    %c0_6 = arith.constant 0 : index
    %9 = vector.load %arg5[%c0_5, %c0_6] : memref<4x1xf32, #tpu.memory_space<vmem>>, vector<4x1xf32>
    tpu.vector_store %arg5[%c0_5, %c0_6], %8 {strides = array<i32>} : memref<4x1xf32, #tpu.memory_space<vmem>>, vector<4x1xf32>,
    %c0_7 = arith.constant 0 : index
    %c0_8 = arith.constant 0 : index
    %10 = vector.load %arg6[%c0_7, %c0_8] : memref<4x1xf32, #tpu.memory_space<vmem>>, vector<4x1xf32>
    %cst_9 = arith.constant dense<0xFF800000> : vector<4xf32>
    %11 = vector.multi_reduction <maximumf>, %4, %cst_9 [1] : vector<4x256xf32> to vector<4xf32>
    %12 = vector.shape_cast %11 : vector<4xf32> to vector<4x1xf32>
    %13 = arith.maximumf %10, %12 : vector<4x1xf32>
    %c0_10 = arith.constant 0 : index
    %c0_11 = arith.constant 0 : index
    %14 = vector.load %arg6[%c0_10, %c0_11] : memref<4x1xf32, #tpu.memory_space<vmem>>, vector<4x1xf32>
    tpu.vector_store %arg6[%c0_10, %c0_11], %13 {strides = array<i32>} : memref<4x1xf32, #tpu.memory_space<vmem>>, vector<4x1xf32>,
    %c0_i32_12 = arith.constant 0 : i32
    %15 = arith.cmpi eq, %arg1, %c0_i32_12 : i32
    %16 = arith.extui %15 : i1 to i32
    %c0_i32_13 = arith.constant 0 : i32
    %17 = arith.cmpi ne, %16, %c0_i32_13 : i32
    scf.if %17 {
      %c0_14 = arith.constant 0 : index
      %c0_15 = arith.constant 0 : index
      %18 = vector.load %arg3[%c0_14, %c0_15] : memref<8x4xf32, #tpu.memory_space<vmem>>, vector<8x4xf32>
      %c0_16 = arith.constant 0 : index
      %c0_17 = arith.constant 0 : index
      %19 = vector.load %arg5[%c0_16, %c0_17] : memref<4x1xf32, #tpu.memory_space<vmem>>, vector<4x1xf32>
      %cst_18 = arith.constant 3.906250e-03 : f32
      %20 = vector.broadcast %cst_18 : f32 to vector<4x1xf32>
      %21 = arith.mulf %19, %20 : vector<4x1xf32>
      %c0_19 = arith.constant 0 : index
      %c0_20 = arith.constant 0 : index
      %22 = vector.load %arg6[%c0_19, %c0_20] : memref<4x1xf32, #tpu.memory_space<vmem>>, vector<4x1xf32>
      %cst_21 = arith.constant dense<0.000000e+00> : vector<8x1xf32>
      %23 = tpu.matmul %18, %21, %cst_21 {dimension_numbers = #tpu.dot_dimension_numbers<[1], [0], [0], [1], [0, 0, 1, 1], [], []>} : vector<8x4xf32>, vector<4x1xf32>, vector<8x1xf32> -> vector<8x1xf32>
      %cst_22 = arith.constant 0.000000e+00 : f32
      %24 = vector.broadcast %cst_22 : f32 to vector<8x1xf32>
      %25 = arith.maximumf %23, %24 : vector<8x1xf32>
      %cst_23 = arith.constant dense<0.000000e+00> : vector<8x1xf32>
      %26 = tpu.matmul %18, %22, %cst_23 {dimension_numbers = #tpu.dot_dimension_numbers<[1], [0], [0], [1], [0, 0, 1, 1], [], []>} : vector<8x4xf32>, vector<4x1xf32>, vector<8x1xf32> -> vector<8x1xf32>
      %cst_24 = arith.constant 0.000000e+00 : f32
      %27 = vector.broadcast %cst_24 : f32 to vector<8x1xf32>
      %28 = arith.maximumf %26, %27 : vector<8x1xf32>
      %29 = arith.addf %25, %28 : vector<8x1xf32>
      %30 = arith.negf %29 : vector<8x1xf32>
      %31 = math.exp %30 : vector<8x1xf32>
      %cst_25 = arith.constant 1.000000e+00 : f32
      %32 = vector.broadcast %cst_25 : f32 to vector<8x1xf32>
      %33 = arith.addf %32, %31 : vector<8x1xf32>
      %34 = arith.divf %32, %33 : vector<8x1xf32>
      %c0_26 = arith.constant 0 : index
      %c0_27 = arith.constant 0 : index
      %c0_28 = arith.constant 0 : index
      %35 = vector.load %arg4[%c0_26, %c0_27, %c0_28] : memref<1x8x1xf32, #tpu.memory_space<vmem>>, vector<1x8x1xf32>
      %36 = vector.shape_cast %35 : vector<1x8x1xf32> to vector<8x1xf32>
      %37 = vector.shape_cast %34 : vector<8x1xf32> to vector<1x8x1xf32>
      tpu.vector_store %arg4[%c0_26, %c0_27, %c0_28], %37 {strides = array<i32>} : memref<1x8x1xf32, #tpu.memory_space<vmem>>, vector<1x8x1xf32>,
    } else {
    }
    return
  }
  func.func @transform_0(%arg0: i32, %arg1: i32) -> (i32, i32, i32) {
    %c0_i32 = arith.constant 0 : i32
    %c0_i32_0 = arith.constant 0 : i32
    return %arg0, %c0_i32, %arg1 : i32, i32, i32
  }
  func.func @transform_1(%arg0: i32, %arg1: i32) -> (i32, i32) {
    %c0_i32 = arith.constant 0 : i32
    %c0_i32_0 = arith.constant 0 : i32
    %c0_i32_1 = arith.constant 0 : i32
    return %c0_i32, %c0_i32_0 : i32, i32
  }
  func.func @transform_2(%arg0: i32, %arg1: i32) -> (i32, i32, i32) {
    %c0_i32 = arith.constant 0 : i32
    %c0_i32_0 = arith.constant 0 : i32
    %c0_i32_1 = arith.constant 0 : i32
    return %arg0, %c0_i32, %c0_i32_0 : i32, i32, i32
  }
}

</mosaic_0001>

<bundles_post_ra>
// kernel: tpu_custom_call.1
= control target key start
LH: loop header
LB: loop body
LE: loop exit
PB: predicated region body
PF: predicated region fallthrough
CT: control target
= control target key end

     0   :  { %7 = vsyncpa [#allocation5], 0  ;;  %s757_s0 = inlined_call_operand.hbm [shape: f32[2,4,256], index: 0, kind: input, shape index: {}]   ;;  %s758_s1 = inlined_call_operand.vmem [shape: f32[8,4], index: 1, kind: input, shape index: {}]   ;;  %s759_s2 = inlined_call_operand.vmem [shape: f32[2,8,1], index: 2, kind: output, shape index: {}]  }
   0x1   :  { %9 = vsyncpa [#allocation5 + $0x1], 0  ;;  %s644_s9 = smov 0   ;;  %s646_s10 = smov 0  }
   0x2   :  { %s648_s11 = smov 0   ;;  %s650_s12 = smov 0  }
   0x3   :  { %s652_s13 = smov 0   ;;  %s654_s14 = smov 0  }
   0x4 LB: > { %s450_s15 = sadd.s32 4294967295, %s623_s14   ;;  %s27_s16 = sadd.s32 1, %s619_s13  ;;  %s623_s14 = sphi %s654_s14, %s15_s14   ;;  %s619_s13 = sphi %s652_s13, %s767_s13   ;;  %s615_s12 = sphi %s650_s12, %s766_s12   ;;  %s611_s11 = sphi %s648_s11, %s765_s11   ;;  %s607_s10 = sphi %s646_s10, %s764_s10   ;;  %s603_s9 = sphi %s644_s9, %s763_s9  }
   0x5   : > { %p29_p0 = scmp.ge.s32.totalorder %s27_s16, 2  ;;  %s36_s17 = sadd.s32 1, %s611_s11 }
   0x6   : > { %p43_p1 = scmp.ne.s32.totalorder %s611_s11, %s607_s10  ;;  %p44_p2 = scmp.eq.s32.totalorder %s623_s14, 0 }
   0x7   : > { %s769_s16 = smov (%p29_p0, %s27_s16), 0  ;;  %p49_p4 = scmp.ne.s32.totalorder %s607_s10, %s603_s9 }
   0x8   : > { %p680_p3 = por %p44_p2, %p43_p1  ;;  %s31_s19 = ssub.s32 %s619_s13, %s769_s16 }
   0x9   : > { %p50_p5 = scmp.eq.s32.totalorder %s450_s15, 0  ;;  %p34_p6 = scmp.eq.s32.totalorder %s31_s19, 0 }
   0xa   : > { %p488_p8 = scmp.lt.s32.totalorder %s623_s14, 2  ;;  %s123_s22 = sand.u32 1, %s611_s11  }
   0xb   : > { %p687_p7 = por %p50_p5, %p49_p4  ;;  %s467_s23 = sshll.u32 %s619_s13, 7 }
   0xc   : > { %s693_s21 = scalar_select %p34_p6, %s611_s11, %s36_s17  }
   0xd   : > { %s454_s24 = sshll.u32 %s123_s22, 3  ;;  %s135_s27 = scalar_lea.hbm %s757_s0, %s467_s23 }
   0xe   : > { %s127_s28 = scalar_lea.vmem [#allocation4], %s454_s24  ;;  %p702_p9 = pnand %p488_p8, %p680_p3 }
   0xf   : > { %s137_s29 = sshll.u32 %s127_s28, 4  ;;  %p457_p10 = scmp.ge.s32.totalorder %s623_s14, 1  ;;  %s138_s29 = int_to_ptr.vmem [resolvable:$true] %s137_s29 }
  0x10   : > { %p142_p11 = scmp.lt.s32.totalorder %s623_s14, 3  ;;  %s124_s3 = scalar_lea.sflag [#allocation5], %s123_s22 }
  0x11   : > { %p547_p12 = pneg %p702_p9  ;;  %s558_s4 = scalar_lea.vmem %s138_s29, 128 }
  0x12   : > { %p559_p13 = scmp.ne.s32.totalorder %s138_s29, %s558_s4  ;;  %s625_s5 = smov [#allocation4]  }
  0x13   : > { %s563_s6 = sshll.u32 %s625_s5, 4  ;;  %s564_s6 = int_to_ptr.vmem [resolvable:$false] %s563_s6 }
  0x14   : > { %p561_p0 = pnand %p559_p13, %p547_p12  ;;  %s565_s7 = scalar_lea.vmem %s564_s6, 256 }
  0x15   : > { %p566_p2 = scmp.lt.s32.totalorder %s138_s29, %s564_s6  ;;  %p567_p3 = scmp.lt.s32.totalorder %s565_s7, %s558_s4 }
  0x16   : > { %p562_p1 = pneg %p561_p0 }
  0x17   : > { %p568_p4 = por %p567_p3, %p566_p2 }
  0x19   : > { %p569_p5 = pnand %p568_p4, %p562_p1 }
  0x1b   : > { %572 = shalt.err (!%p569_p5)
}
  0x1c   : > { %487 = dma.hbm_to_vmem [thread:$0]  (!%p702_p9), %s135_s27, 128, %s138_s29, %s124_s3  }
  0x1d   : > { %p143_p6 = pnand %p457_p10, %p142_p11 }
  0x1e   : > { %s148_s8 = sand.u32 (!%p143_p6), 1, %s607_s10  }
  0x1f   : > { %146 = sbr.rel (%p143_p6) target bundleno = 426 (0x1aa), region = 28  ;;  %s458_s9 = sshll.u32 (!%p143_p6), %s148_s8, 3 }
  0x20   : > { %s149_s15 = scalar_lea.sflag (!%p143_p6), [#allocation5], %s148_s8  ;;  %s152_s17 = scalar_lea.vmem (!%p143_p6), [#allocation4], %s458_s9 }
  0x24   : > { %598 = dma.done.wait (%p687_p7), %s149_s15, 128  }
  0x25   : > { %600 = vsyncadd (%p687_p7), %s149_s15, 4294967168  ;;  %vm181_vm0 = vcmask 3072   ;;  %v626_v0 = vmov 0.0   ;;  %vm189_vm1 = vcmask 1043456   ;;  %v184_v1 = vld [vmem:[%s152_s17] sm:$0xff]  ;;  %v627_v9 = vmov -inf  }
  0x26   : > { %182 = vst.msk [vmem:[#allocation2] sm:$0xf] %vm181_vm0, %v626_v0  ;;  %472 = vmatprep.subr.mxu0 %v626_v0  ;;  %477 = vmatprep.subr.mxu1 %v626_v0  ;;  %v187_v2 = vcombine.high %v184_v1, %v184_v1  ;;  %v190_v3 = vsel %vm189_vm1, %v184_v1, 0.0  ;;  %v199_v5 = vsel %vm189_vm1, %v184_v1, -inf  ;;  %183 = vst.msk [vmem:[#allocation3] sm:$0xf] %vm181_vm0, %v627_v9 }
  0x27   : > { %vm628_vm2 = vmmov 0   ;;  %v209_v18 = vld [vmem:[%s758_s1] sm:$0xff]  ;;  %vm213_vm3 = vcmask 31744   ;;  %p173_p7 = scmp.lt.s32.totalorder %s615_s12, 1  ;;  %vm372_vm4 = vcmask 7168  }
  0x28   : > { %v191_v4 = vsel %vm189_vm1, %v187_v2, 0.0  ;;  %v200_v6 = vsel %vm189_vm1, %v187_v2, -inf  ;;  %474 = vmatprep.mubr.msk.f32.mxu0 %vm628_vm2, %v626_v0  ;;  %479 = vmatprep.mubr.msk.f32.mxu1 %vm628_vm2, %v626_v0 }
  0x29   : > { %v192_v7 = vadd.f32 %v191_v4, %v190_v3  ;;  %v201_v8 = vmax.f32 %v199_v5, %v200_v6  ;;  %s771_s12 = smov (!%p173_p7, %s615_s12), 1 }
  0x2a   : > { %s459_s20 = sshll.u32 %s771_s12, 3 }
  0x2b   : > { %193 = vadd.xlane.f32.xlu0 %v192_v7  ;;  %s176_s24 = scalar_lea.vmem %s759_s2, %s459_s20 }
  0x2d   : > { %v185_v10 = vld [vmem:[#allocation2] sm:$0xf]  ;;  %v198_v13 = vld [vmem:[#allocation3] sm:$0xf] }
  0x2f   : > { %202 = vmax.xlane.f32.xlu0 %v201_v8 }
  0xb4   : > { %v194_v11 = vpop.xlane.xlu0 %193 }
  0xb5   : > { %v195_v12 = vadd.f32 %v194_v11, %v185_v10 }
  0xb7   : > { %197 = vst.msk [vmem:[#allocation2] sm:$0xf] %vm181_vm0, %v195_v12 }
  0xb8   : > { %v203_v14 = vpop.xlane.xlu0 %202 }
  0xb9   : > { %v204_v15 = vmax.f32 %v198_v13, %v203_v14 }
  0xbb   : > { %205 = vst.msk [vmem:[#allocation3] sm:$0xf] %vm181_vm0, %v204_v15 }
  0xbe   : > { %v210_v16 = vld [vmem:[#allocation2] sm:$0xf] }
  0xbf   : > { %v211_v17 = vmul.f32 0.00390625, %v210_v16 }
  0xc1   : > { %473 = vmatpush3.msk.msra.mxu0 %vm189_vm1, %v211_v17 }
  0xc2   : > { %475 = vmatmul.mubr.msk.f32.vlgmr.msra.gmra.mxu0 %vm213_vm3, %v209_v18  ;;  %v212_v19 = vld [vmem:[#allocation3] sm:$0xf] }
  0xc3   : > { %478 = vmatpush3.msk.msra.mxu1 %vm189_vm1, %v212_v19 }
  0xc4   : > { %480 = vmatmul.mubr.msk.f32.vlgmr.msra.gmra.mxu1 %vm213_vm3, %v209_v18 }
 0x182   : > { %v286_v20 = vpop.f32.mrf.mxu0 }
 0x183   : > { %v290_v21 = vmax.f32 %v286_v20, 0.0 }
 0x184   : > { %v476_v22 = vpop.f32.mrf.mxu0  ;;  %v360_v23 = vpop.f32.mrf.mxu1 }
 0x185   : > { %v364_v24 = vmax.f32 %v360_v23, 0.0 }
 0x186   : > { %v481_v25 = vpop.f32.mrf.mxu1 }
 0x187   : > { %v365_v26 = vadd.f32 %v364_v24, %v290_v21 }
 0x189   : > { %v464_v27 = vmul.f32 -1.442695, %v365_v26 }
 0x18b   : > { %541 = vpow2.f32 %v464_v27 }
 0x198   : > { %v542_v28 = vpop.eup %541 }
 0x199   : > { %v369_v29 = vadd.f32 1.0, %v542_v28 }
 0x19b   : > { %543 = vrcp.f32 %v369_v29 }
 0x1a8   : > { %v544_v30 = vpop.eup %543 }
 0x1a9   : > { %373 = vst.msk [vmem:[%s176_s24] sm:$0xff] %vm372_vm4, %v544_v30 }
 0x1aa PF: > { %s15_s14 = sadd.s32 1, %s623_s14   ;;  %s763_s9 = smov %s607_s10 }
 0x1ab   : > { %p12_p8 = scmp.ge.s32.totalorder %s15_s14, 4   ;;  %s764_s10 = smov %s611_s11 }
 0x1ac   : > { %s765_s11 = smov %s693_s21  ;;  %s766_s12 = smov %s619_s13 }
 0x1ad   : > { %s767_s13 = smov %s769_s16  ;;  %14 = sbr.rel (!%p12_p8) target bundleno = 4 (0x4), region = 76 }
 0x1b2   :  { %393 = vsyncpa [#allocation5], 1 }
 0x1b3   :  { %395 = vsyncpa [#allocation5 + $0x1], 1 }

</bundles_post_ra>
